<compile_context>
chip_gen: v7x
topology: tpu7x:2x2x1
jax: 0.10.0
libtpu: 0.0.40
codegen_flags: <defaults>
</compile_context>

<pallas_src>
import functools

import jax
import jax.numpy as jnp
from jax import lax
from jax.experimental import pallas as pl
from jax.experimental.pallas import tpu as pltpu


def _round_up(x, m):
    return ((x + m - 1) // m) * m


# ---------------------------------------------------------------------------
# Kernel A: direct conv (kh*kw accumulated MXU dots) + per-image channel stats
# ---------------------------------------------------------------------------
def _conv_stats_kernel(x_ref, w_ref, y_ref, stats_ref, *, kh, kw, stride, ho, wo):
    # x_ref:     (1, stride*kw, Cin, (ho + dimax) * wo)  phase re-layout of x
    # w_ref:     (kh*kw, tile_c, Cin)
    # y_ref:     (1, tile_c, ho*wo)                      conv output (cast)
    # stats_ref: (1, tile_c, 2)                          [sum, sum_sq] in f32
    hw = ho * wo
    tile_c = y_ref.shape[1]
    acc = jnp.zeros((tile_c, hw), dtype=jnp.float32)
    for r in range(stride):                     # row-phase of the padded input
        for kj in range(kw):                    # kernel column tap
            xr = x_ref[0, r * kw + kj]          # (Cin, (ho+dimax)*wo)
            n_di = (kh - 1 - r) // stride + 1
            for di in range(n_di):              # row offset inside the phase
                ki = stride * di + r            # kernel row tap
                wk = w_ref[ki * kw + kj]        # (tile_c, Cin)
                xt = xr[:, di * wo: di * wo + hw]   # (Cin, ho*wo), contiguous
                acc = acc + jnp.dot(wk, xt, preferred_element_type=jnp.float32)
    y_ref[0] = acc.astype(y_ref.dtype)
    # Per-channel partial stats from the exact f32 accumulator.
    s = jnp.sum(acc, axis=1, keepdims=True)           # (tile_c, 1)
    q = jnp.sum(acc * acc, axis=1, keepdims=True)     # (tile_c, 1)
    stats_ref[0] = jnp.concatenate([s, q], axis=1)    # (tile_c, 2)


# ---------------------------------------------------------------------------
# Kernel B: fused BN (per-channel scale/shift) + ReLU; output is already NCHW
# ---------------------------------------------------------------------------
def _bn_relu_kernel(y_ref, scale_ref, shift_ref, o_ref):
    y = y_ref[0].astype(jnp.float32)                  # (tile_c, ho*wo)
    o = jnp.maximum(y * scale_ref[0] + shift_ref[0], 0.0)
    o_ref[0] = o.astype(o_ref.dtype)


@functools.partial(jax.jit, static_argnames=("stride", "padding", "eps",
                                             "matmul_dtype", "y_dtype"))
def conv_block_forward(x_nchw, weight_oihw, gamma, beta, *, stride=2, padding=1,
                       eps=1e-5, matmul_dtype=jnp.bfloat16, y_dtype=jnp.bfloat16):
    """ConvBlock forward. x: (N, Cin, H, W) -> (N, Cout, Ho, Wo), NCHW in/out."""
    n, cin, h, w = x_nchw.shape
    cout, _, kh, kw = weight_oihw.shape

    ho = (h + 2 * padding - kh) // stride + 1
    wo = (w + 2 * padding - kw) // stride + 1
    hw = ho * wo
    dimax = (kh - 1) // stride
    hp2 = ho + dimax                    # rows per row-phase
    hp = stride * hp2                   # padded rows needed
    wp = stride * (wo - 1) + kw         # padded cols needed
    pad_b = hp - h - padding
    pad_r = wp - w - padding
    assert pad_b >= 0 and pad_r >= 0, "unsupported (kernel, stride, padding) combo"

    # Channel tiling: keep the sublane (second-minor) dim a multiple of 8 or full.
    if cout <= 128:
        cout_pad = _round_up(cout, 8)
        tile_c = cout_pad
    else:
        cout_pad = _round_up(cout, 128)
        tile_c = 128
    n_cb = cout_pad // tile_c

    # ---- glue: phase re-layout of the padded input (no 9x im2col in HBM) ----
    xp = jnp.pad(x_nchw, ((0, 0), (0, 0), (padding, pad_b), (padding, pad_r)))
    slabs = []
    for r in range(stride):
        for kj in range(kw):
            v = xp[:, :, r:r + stride * hp2:stride, kj:kj + stride * wo:stride]
            slabs.append(v.reshape(n, cin, hp2 * wo))
    xprep = jnp.stack(slabs, axis=1).astype(matmul_dtype)  # (n, s*kw, cin, hp2*wo)

    # weight (Cout, Cin, KH, KW) -> (KH*KW, Cout_pad, Cin)
    wt = jnp.transpose(weight_oihw, (2, 3, 0, 1)).reshape(kh * kw, cout, cin)
    wt = jnp.pad(wt, ((0, 0), (0, cout_pad - cout), (0, 0))).astype(matmul_dtype)

    l_in = hp2 * wo
    kernel_a = functools.partial(_conv_stats_kernel, kh=kh, kw=kw,
                                 stride=stride, ho=ho, wo=wo)
    y, stats = pl.pallas_call(
        kernel_a,
        out_shape=(jax.ShapeDtypeStruct((n, cout_pad, hw), y_dtype),
                   jax.ShapeDtypeStruct((n, cout_pad, 2), jnp.float32)),
        grid_spec=pltpu.PrefetchScalarGridSpec(
            num_scalar_prefetch=0,
            grid=(n, n_cb),
            in_specs=[
                pl.BlockSpec((1, stride * kw, cin, l_in),
                             lambda i, jc: (i, 0, 0, 0)),
                pl.BlockSpec((kh * kw, tile_c, cin), lambda i, jc: (0, jc, 0)),
            ],
            out_specs=[
                pl.BlockSpec((1, tile_c, hw), lambda i, jc: (i, jc, 0)),
                pl.BlockSpec((1, tile_c, 2), lambda i, jc: (i, jc, 0)),
            ],
        ),
        compiler_params=pltpu.CompilerParams(
            dimension_semantics=("parallel", "parallel"),
            vmem_limit_bytes=48 * 1024 * 1024),
    )(xprep, wt)

    # ---- glue: fold batch stats into per-channel scale/shift (all f32) ----
    stats_tot = jnp.sum(stats, axis=0)                      # (cout_pad, 2)
    count = jnp.float32(n * hw)
    mean = stats_tot[:, 0] / count
    var = jnp.maximum(stats_tot[:, 1] / count - mean * mean, 0.0)  # biased var
    inv_std = lax.rsqrt(var + eps)
    gamma_p = jnp.pad(gamma.astype(jnp.float32), (0, cout_pad - cout))
    beta_p = jnp.pad(beta.astype(jnp.float32), (0, cout_pad - cout))
    scale = (gamma_p * inv_std).reshape(1, cout_pad, 1)
    shift = (beta_p - mean * gamma_p * inv_std).reshape(1, cout_pad, 1)

    # ---- kernel B: fused BN + ReLU (lane dim = Ho*Wo, output already NCHW) ----
    out_p = pl.pallas_call(
        _bn_relu_kernel,
        out_shape=jax.ShapeDtypeStruct((n, cout_pad, hw), x_nchw.dtype),
        grid_spec=pltpu.PrefetchScalarGridSpec(
            num_scalar_prefetch=0,
            grid=(n, n_cb),
            in_specs=[
                pl.BlockSpec((1, tile_c, hw), lambda i, jc: (i, jc, 0)),
                pl.BlockSpec((1, tile_c, 1), lambda i, jc: (0, jc, 0)),
                pl.BlockSpec((1, tile_c, 1), lambda i, jc: (0, jc, 0)),
            ],
            out_specs=pl.BlockSpec((1, tile_c, hw), lambda i, jc: (i, jc, 0)),
        ),
        compiler_params=pltpu.CompilerParams(
            dimension_semantics=("parallel", "parallel"),
            vmem_limit_bytes=48 * 1024 * 1024),
    )(y, scale, shift)

    # No trailing transpose: slice off channel padding (no-op when cout==cout_pad).
    return out_p[:, :cout, :].reshape(n, cout, ho, wo)


# ---------------------------------------------------------------------------
# Pure-JAX reference (mirrors PyTorch training-mode forward)
# ---------------------------------------------------------------------------
def _reference(x, w, gamma, beta, stride=2, padding=1, eps=1e-5):
    y = lax.conv_general_dilated(
        x, w, window_strides=(stride, stride),
        padding=((padding, padding), (padding, padding)),
        dimension_numbers=("NCHW", "OIHW", "NCHW"))
    mean = y.mean(axis=(0, 2, 3), keepdims=True)
    var = ((y - mean) ** 2).mean(axis=(0, 2, 3), keepdims=True)  # biased
    yhat = (y - mean) * lax.rsqrt(var + eps)
    yhat = yhat * gamma.reshape(1, -1, 1, 1) + beta.reshape(1, -1, 1, 1)
    return jnp.maximum(yhat, 0.0)


if __name__ == "__main__":
    key = jax.random.PRNGKey(0)
    k_x, k_w, k_g, k_b = jax.random.split(key, 4)

    N, C_IN, H, W = 2, 4, 16, 16
    C_OUT, KH, KW = 8, 3, 3

    x = jax.random.normal(k_x, (N, C_IN, H, W), dtype=jnp.float32)
    weight = jax.random.normal(k_w, (C_OUT, C_IN, KH, KW), dtype=jnp.float32) * 0.1
    gamma = 1.0 + 0.1 * jax.random.normal(k_g, (C_OUT,), dtype=jnp.float32)
    beta = 0.1 * jax.random.normal(k_b, (C_OUT,), dtype=jnp.float32)

    ref = _reference(x, weight, gamma, beta)

    # Strict check: f32 matmul + f32 intermediate (tight tolerance).
    out_f32 = conv_block_forward(x, weight, gamma, beta,
                                 matmul_dtype=jnp.float32, y_dtype=jnp.float32)
    out_f32 = jax.block_until_ready(out_f32)
    assert out_f32.shape == ref.shape == (N, C_OUT, H // 2, W // 2), out_f32.shape
    assert jnp.allclose(out_f32, ref, atol=1e-4, rtol=1e-4), \
        float(jnp.max(jnp.abs(out_f32 - ref)))

    # Performance path: bf16 matmul operands + bf16 intermediate (looser tol).
    out_bf16 = conv_block_forward(x, weight, gamma, beta)
    out_bf16 = jax.block_until_ready(out_bf16)
    assert out_bf16.shape == ref.shape
    assert jnp.allclose(out_bf16, ref, atol=5e-2, rtol=5e-2), \
        float(jnp.max(jnp.abs(out_bf16 - ref)))

    print("KERNEL_OK")
</pallas_src>

<mosaic_0001>
module attributes {stable_mosaic.version = 11 : i64} {
  func.func @_conv_stats_kernel(%arg0: i32, %arg1: i32, %arg2: memref<1x6x4x72xf32, #tpu.memory_space<vmem>>, %arg3: memref<9x8x4xf32, #tpu.memory_space<vmem>>, %arg4: memref<1x8x64xf32, #tpu.memory_space<vmem>>, %arg5: memref<1x8x2xf32, #tpu.memory_space<vmem>>) attributes {dimension_semantics = [#tpu.dimension_semantics<parallel>, #tpu.dimension_semantics<parallel>], iteration_bounds = array<i64: 2, 1>, scalar_prefetch = 0 : i64, scratch_operands = 0 : i64, tpu.core_type = #tpu.core_type<tc>, window_params = [{transform_indices = @transform_0, window_bounds = array<i64: 1, 6, 4, 72>}, {transform_indices = @transform_1, window_bounds = array<i64: 9, 8, 4>}, {transform_indices = @transform_2, window_bounds = array<i64: 1, 8, 64>}, {transform_indices = @transform_3, window_bounds = array<i64: 1, 8, 2>}]} {
    %cst = arith.constant 0.000000e+00 : f32
    %0 = vector.broadcast %cst : f32 to vector<8x64xf32>
    %c0 = arith.constant 0 : index
    %c0_0 = arith.constant 0 : index
    %c0_1 = arith.constant 0 : index
    %c0_2 = arith.constant 0 : index
    %1 = vector.load %arg2[%c0, %c0_0, %c0_1, %c0_2] : memref<1x6x4x72xf32, #tpu.memory_space<vmem>>, vector<1x1x4x72xf32>
    %2 = vector.shape_cast %1 : vector<1x1x4x72xf32> to vector<4x72xf32>
    %c0_3 = arith.constant 0 : index
    %c0_4 = arith.constant 0 : index
    %c0_5 = arith.constant 0 : index
    %3 = vector.load %arg3[%c0_3, %c0_4, %c0_5] : memref<9x8x4xf32, #tpu.memory_space<vmem>>, vector<1x8x4xf32>
    %4 = vector.shape_cast %3 : vector<1x8x4xf32> to vector<8x4xf32>
    %5 = vector.extract_strided_slice %2 {offsets = [0, 0], sizes = [4, 64], strides = [1, 1]} : vector<4x72xf32> to vector<4x64xf32>
    %cst_6 = arith.constant dense<0.000000e+00> : vector<8x64xf32>
    %6 = tpu.matmul %4, %5, %cst_6 {dimension_numbers = #tpu.dot_dimension_numbers<[1], [0], [0], [1], [0, 0, 1, 1], [], []>} : vector<8x4xf32>, vector<4x64xf32>, vector<8x64xf32> -> vector<8x64xf32>
    %7 = arith.addf %0, %6 : vector<8x64xf32>
    %c6 = arith.constant 6 : index
    %c0_7 = arith.constant 0 : index
    %c0_8 = arith.constant 0 : index
    %8 = vector.load %arg3[%c6, %c0_7, %c0_8] : memref<9x8x4xf32, #tpu.memory_space<vmem>>, vector<1x8x4xf32>
    %9 = vector.shape_cast %8 : vector<1x8x4xf32> to vector<8x4xf32>
    %10 = vector.extract_strided_slice %2 {offsets = [0, 8], sizes = [4, 64], strides = [1, 1]} : vector<4x72xf32> to vector<4x64xf32>
    %cst_9 = arith.constant dense<0.000000e+00> : vector<8x64xf32>
    %11 = tpu.matmul %9, %10, %cst_9 {dimension_numbers = #tpu.dot_dimension_numbers<[1], [0], [0], [1], [0, 0, 1, 1], [], []>} : vector<8x4xf32>, vector<4x64xf32>, vector<8x64xf32> -> vector<8x64xf32>
    %12 = arith.addf %7, %11 : vector<8x64xf32>
    %c0_10 = arith.constant 0 : index
    %c1 = arith.constant 1 : index
    %c0_11 = arith.constant 0 : index
    %c0_12 = arith.constant 0 : index
    %13 = vector.load %arg2[%c0_10, %c1, %c0_11, %c0_12] : memref<1x6x4x72xf32, #tpu.memory_space<vmem>>, vector<1x1x4x72xf32>
    %14 = vector.shape_cast %13 : vector<1x1x4x72xf32> to vector<4x72xf32>
    %c1_13 = arith.constant 1 : index
    %c0_14 = arith.constant 0 : index
    %c0_15 = arith.constant 0 : index
    %15 = vector.load %arg3[%c1_13, %c0_14, %c0_15] : memref<9x8x4xf32, #tpu.memory_space<vmem>>, vector<1x8x4xf32>
    %16 = vector.shape_cast %15 : vector<1x8x4xf32> to vector<8x4xf32>
    %17 = vector.extract_strided_slice %14 {offsets = [0, 0], sizes = [4, 64], strides = [1, 1]} : vector<4x72xf32> to vector<4x64xf32>
    %cst_16 = arith.constant dense<0.000000e+00> : vector<8x64xf32>
    %18 = tpu.matmul %16, %17, %cst_16 {dimension_numbers = #tpu.dot_dimension_numbers<[1], [0], [0], [1], [0, 0, 1, 1], [], []>} : vector<8x4xf32>, vector<4x64xf32>, vector<8x64xf32> -> vector<8x64xf32>
    %19 = arith.addf %12, %18 : vector<8x64xf32>
    %c7 = arith.constant 7 : index
    %c0_17 = arith.constant 0 : index
    %c0_18 = arith.constant 0 : index
    %20 = vector.load %arg3[%c7, %c0_17, %c0_18] : memref<9x8x4xf32, #tpu.memory_space<vmem>>, vector<1x8x4xf32>
    %21 = vector.shape_cast %20 : vector<1x8x4xf32> to vector<8x4xf32>
    %22 = vector.extract_strided_slice %14 {offsets = [0, 8], sizes = [4, 64], strides = [1, 1]} : vector<4x72xf32> to vector<4x64xf32>
    %cst_19 = arith.constant dense<0.000000e+00> : vector<8x64xf32>
    %23 = tpu.matmul %21, %22, %cst_19 {dimension_numbers = #tpu.dot_dimension_numbers<[1], [0], [0], [1], [0, 0, 1, 1], [], []>} : vector<8x4xf32>, vector<4x64xf32>, vector<8x64xf32> -> vector<8x64xf32>
    %24 = arith.addf %19, %23 : vector<8x64xf32>
    %c0_20 = arith.constant 0 : index
    %c2 = arith.constant 2 : index
    %c0_21 = arith.constant 0 : index
    %c0_22 = arith.constant 0 : index
    %25 = vector.load %arg2[%c0_20, %c2, %c0_21, %c0_22] : memref<1x6x4x72xf32, #tpu.memory_space<vmem>>, vector<1x1x4x72xf32>
    %26 = vector.shape_cast %25 : vector<1x1x4x72xf32> to vector<4x72xf32>
    %c2_23 = arith.constant 2 : index
    %c0_24 = arith.constant 0 : index
    %c0_25 = arith.constant 0 : index
    %27 = vector.load %arg3[%c2_23, %c0_24, %c0_25] : memref<9x8x4xf32, #tpu.memory_space<vmem>>, vector<1x8x4xf32>
    %28 = vector.shape_cast %27 : vector<1x8x4xf32> to vector<8x4xf32>
    %29 = vector.extract_strided_slice %26 {offsets = [0, 0], sizes = [4, 64], strides = [1, 1]} : vector<4x72xf32> to vector<4x64xf32>
    %cst_26 = arith.constant dense<0.000000e+00> : vector<8x64xf32>
    %30 = tpu.matmul %28, %29, %cst_26 {dimension_numbers = #tpu.dot_dimension_numbers<[1], [0], [0], [1], [0, 0, 1, 1], [], []>} : vector<8x4xf32>, vector<4x64xf32>, vector<8x64xf32> -> vector<8x64xf32>
    %31 = arith.addf %24, %30 : vector<8x64xf32>
    %c8 = arith.constant 8 : index
    %c0_27 = arith.constant 0 : index
    %c0_28 = arith.constant 0 : index
    %32 = vector.load %arg3[%c8, %c0_27, %c0_28] : memref<9x8x4xf32, #tpu.memory_space<vmem>>, vector<1x8x4xf32>
    %33 = vector.shape_cast %32 : vector<1x8x4xf32> to vector<8x4xf32>
    %34 = vector.extract_strided_slice %26 {offsets = [0, 8], sizes = [4, 64], strides = [1, 1]} : vector<4x72xf32> to vector<4x64xf32>
    %cst_29 = arith.constant dense<0.000000e+00> : vector<8x64xf32>
    %35 = tpu.matmul %33, %34, %cst_29 {dimension_numbers = #tpu.dot_dimension_numbers<[1], [0], [0], [1], [0, 0, 1, 1], [], []>} : vector<8x4xf32>, vector<4x64xf32>, vector<8x64xf32> -> vector<8x64xf32>
    %36 = arith.addf %31, %35 : vector<8x64xf32>
    %c0_30 = arith.constant 0 : index
    %c3 = arith.constant 3 : index
    %c0_31 = arith.constant 0 : index
    %c0_32 = arith.constant 0 : index
    %37 = vector.load %arg2[%c0_30, %c3, %c0_31, %c0_32] : memref<1x6x4x72xf32, #tpu.memory_space<vmem>>, vector<1x1x4x72xf32>
    %38 = vector.shape_cast %37 : vector<1x1x4x72xf32> to vector<4x72xf32>
    %c3_33 = arith.constant 3 : index
    %c0_34 = arith.constant 0 : index
    %c0_35 = arith.constant 0 : index
    %39 = vector.load %arg3[%c3_33, %c0_34, %c0_35] : memref<9x8x4xf32, #tpu.memory_space<vmem>>, vector<1x8x4xf32>
    %40 = vector.shape_cast %39 : vector<1x8x4xf32> to vector<8x4xf32>
    %41 = vector.extract_strided_slice %38 {offsets = [0, 0], sizes = [4, 64], strides = [1, 1]} : vector<4x72xf32> to vector<4x64xf32>
    %cst_36 = arith.constant dense<0.000000e+00> : vector<8x64xf32>
    %42 = tpu.matmul %40, %41, %cst_36 {dimension_numbers = #tpu.dot_dimension_numbers<[1], [0], [0], [1], [0, 0, 1, 1], [], []>} : vector<8x4xf32>, vector<4x64xf32>, vector<8x64xf32> -> vector<8x64xf32>
    %43 = arith.addf %36, %42 : vector<8x64xf32>
    %c0_37 = arith.constant 0 : index
    %c4 = arith.constant 4 : index
    %c0_38 = arith.constant 0 : index
    %c0_39 = arith.constant 0 : index
    %44 = vector.load %arg2[%c0_37, %c4, %c0_38, %c0_39] : memref<1x6x4x72xf32, #tpu.memory_space<vmem>>, vector<1x1x4x72xf32>
    %45 = vector.shape_cast %44 : vector<1x1x4x72xf32> to vector<4x72xf32>
    %c4_40 = arith.constant 4 : index
    %c0_41 = arith.constant 0 : index
    %c0_42 = arith.constant 0 : index
    %46 = vector.load %arg3[%c4_40, %c0_41, %c0_42] : memref<9x8x4xf32, #tpu.memory_space<vmem>>, vector<1x8x4xf32>
    %47 = vector.shape_cast %46 : vector<1x8x4xf32> to vector<8x4xf32>
    %48 = vector.extract_strided_slice %45 {offsets = [0, 0], sizes = [4, 64], strides = [1, 1]} : vector<4x72xf32> to vector<4x64xf32>
    %cst_43 = arith.constant dense<0.000000e+00> : vector<8x64xf32>
    %49 = tpu.matmul %47, %48, %cst_43 {dimension_numbers = #tpu.dot_dimension_numbers<[1], [0], [0], [1], [0, 0, 1, 1], [], []>} : vector<8x4xf32>, vector<4x64xf32>, vector<8x64xf32> -> vector<8x64xf32>
    %50 = arith.addf %43, %49 : vector<8x64xf32>
    %c0_44 = arith.constant 0 : index
    %c5 = arith.constant 5 : index
    %c0_45 = arith.constant 0 : index
    %c0_46 = arith.constant 0 : index
    %51 = vector.load %arg2[%c0_44, %c5, %c0_45, %c0_46] : memref<1x6x4x72xf32, #tpu.memory_space<vmem>>, vector<1x1x4x72xf32>
    %52 = vector.shape_cast %51 : vector<1x1x4x72xf32> to vector<4x72xf32>
    %c5_47 = arith.constant 5 : index
    %c0_48 = arith.constant 0 : index
    %c0_49 = arith.constant 0 : index
    %53 = vector.load %arg3[%c5_47, %c0_48, %c0_49] : memref<9x8x4xf32, #tpu.memory_space<vmem>>, vector<1x8x4xf32>
    %54 = vector.shape_cast %53 : vector<1x8x4xf32> to vector<8x4xf32>
    %55 = vector.extract_strided_slice %52 {offsets = [0, 0], sizes = [4, 64], strides = [1, 1]} : vector<4x72xf32> to vector<4x64xf32>
    %cst_50 = arith.constant dense<0.000000e+00> : vector<8x64xf32>
    %56 = tpu.matmul %54, %55, %cst_50 {dimension_numbers = #tpu.dot_dimension_numbers<[1], [0], [0], [1], [0, 0, 1, 1], [], []>} : vector<8x4xf32>, vector<4x64xf32>, vector<8x64xf32> -> vector<8x64xf32>
    %57 = arith.addf %50, %56 : vector<8x64xf32>
    %c0_51 = arith.constant 0 : index
    %c0_52 = arith.constant 0 : index
    %c0_53 = arith.constant 0 : index
    %58 = vector.load %arg4[%c0_51, %c0_52, %c0_53] : memref<1x8x64xf32, #tpu.memory_space<vmem>>, vector<1x8x64xf32>
    %59 = vector.shape_cast %58 : vector<1x8x64xf32> to vector<8x64xf32>
    %60 = vector.shape_cast %57 : vector<8x64xf32> to vector<1x8x64xf32>
    tpu.vector_store %arg4[%c0_51, %c0_52, %c0_53], %60 {strides = array<i32>} : memref<1x8x64xf32, #tpu.memory_space<vmem>>, vector<1x8x64xf32>,
    %cst_54 = arith.constant dense<0.000000e+00> : vector<8xf32>
    %61 = vector.multi_reduction <add>, %57, %cst_54 [1] : vector<8x64xf32> to vector<8xf32>
    %62 = vector.shape_cast %61 : vector<8xf32> to vector<8x1xf32>
    %63 = arith.mulf %57, %57 : vector<8x64xf32>
    %cst_55 = arith.constant dense<0.000000e+00> : vector<8xf32>
    %64 = vector.multi_reduction <add>, %63, %cst_55 [1] : vector<8x64xf32> to vector<8xf32>
    %65 = vector.shape_cast %64 : vector<8xf32> to vector<8x1xf32>
    %66 = tpu.concatenate %62, %65 in 1 : vector<8x1xf32>, vector<8x1xf32> -> vector<8x2xf32>
    %c0_56 = arith.constant 0 : index
    %c0_57 = arith.constant 0 : index
    %c0_58 = arith.constant 0 : index
    %67 = vector.load %arg5[%c0_56, %c0_57, %c0_58] : memref<1x8x2xf32, #tpu.memory_space<vmem>>, vector<1x8x2xf32>
    %68 = vector.shape_cast %67 : vector<1x8x2xf32> to vector<8x2xf32>
    %69 = vector.shape_cast %66 : vector<8x2xf32> to vector<1x8x2xf32>
    tpu.vector_store %arg5[%c0_56, %c0_57, %c0_58], %69 {strides = array<i32>} : memref<1x8x2xf32, #tpu.memory_space<vmem>>, vector<1x8x2xf32>,
    return
  }
  func.func @transform_0(%arg0: i32, %arg1: i32) -> (i32, i32, i32, i32) {
    %c0_i32 = arith.constant 0 : i32
    %c0_i32_0 = arith.constant 0 : i32
    %c0_i32_1 = arith.constant 0 : i32
    %c0_i32_2 = arith.constant 0 : i32
    return %arg0, %c0_i32, %c0_i32_0, %c0_i32_1 : i32, i32, i32, i32
  }
  func.func @transform_1(%arg0: i32, %arg1: i32) -> (i32, i32, i32) {
    %c0_i32 = arith.constant 0 : i32
    %c0_i32_0 = arith.constant 0 : i32
    %c0_i32_1 = arith.constant 0 : i32
    return %c0_i32, %arg1, %c0_i32_0 : i32, i32, i32
  }
  func.func @transform_2(%arg0: i32, %arg1: i32) -> (i32, i32, i32) {
    %c0_i32 = arith.constant 0 : i32
    %c0_i32_0 = arith.constant 0 : i32
    return %arg0, %arg1, %c0_i32 : i32, i32, i32
  }
  func.func @transform_3(%arg0: i32, %arg1: i32) -> (i32, i32, i32) {
    %c0_i32 = arith.constant 0 : i32
    %c0_i32_0 = arith.constant 0 : i32
    return %arg0, %arg1, %c0_i32 : i32, i32, i32
  }
}

module attributes {stable_mosaic.version = 11 : i64} {
  func.func @_bn_relu_kernel(%arg0: i32, %arg1: i32, %arg2: memref<1x8x64xf32, #tpu.memory_space<vmem>>, %arg3: memref<1x8x1xf32, #tpu.memory_space<vmem>>, %arg4: memref<1x8x1xf32, #tpu.memory_space<vmem>>, %arg5: memref<1x8x64xf32, #tpu.memory_space<vmem>>) attributes {dimension_semantics = [#tpu.dimension_semantics<parallel>, #tpu.dimension_semantics<parallel>], iteration_bounds = array<i64: 2, 1>, scalar_prefetch = 0 : i64, scratch_operands = 0 : i64, tpu.core_type = #tpu.core_type<tc>, window_params = [{transform_indices = @transform_0, window_bounds = array<i64: 1, 8, 64>}, {transform_indices = @transform_1, window_bounds = array<i64: 1, 8, 1>}, {transform_indices = @transform_2, window_bounds = array<i64: 1, 8, 1>}, {transform_indices = @transform_3, window_bounds = array<i64: 1, 8, 64>}]} {
    %c0 = arith.constant 0 : index
    %c0_0 = arith.constant 0 : index
    %c0_1 = arith.constant 0 : index
    %0 = vector.load %arg2[%c0, %c0_0, %c0_1] : memref<1x8x64xf32, #tpu.memory_space<vmem>>, vector<1x8x64xf32>
    %1 = vector.shape_cast %0 : vector<1x8x64xf32> to vector<8x64xf32>
    %c0_2 = arith.constant 0 : index
    %c0_3 = arith.constant 0 : index
    %c0_4 = arith.constant 0 : index
    %2 = vector.load %arg3[%c0_2, %c0_3, %c0_4] : memref<1x8x1xf32, #tpu.memory_space<vmem>>, vector<1x8x1xf32>
    %3 = vector.shape_cast %2 : vector<1x8x1xf32> to vector<8x1xf32>
    %4 = vector.broadcast %3 : vector<8x1xf32> to vector<8x64xf32>
    %5 = arith.mulf %1, %4 : vector<8x64xf32>
    %c0_5 = arith.constant 0 : index
    %c0_6 = arith.constant 0 : index
    %c0_7 = arith.constant 0 : index
    %6 = vector.load %arg4[%c0_5, %c0_6, %c0_7] : memref<1x8x1xf32, #tpu.memory_space<vmem>>, vector<1x8x1xf32>
    %7 = vector.shape_cast %6 : vector<1x8x1xf32> to vector<8x1xf32>
    %8 = vector.broadcast %7 : vector<8x1xf32> to vector<8x64xf32>
    %9 = arith.addf %5, %8 : vector<8x64xf32>
    %cst = arith.constant 0.000000e+00 : f32
    %10 = vector.broadcast %cst : f32 to vector<8x64xf32>
    %11 = arith.maximumf %9, %10 : vector<8x64xf32>
    %c0_8 = arith.constant 0 : index
    %c0_9 = arith.constant 0 : index
    %c0_10 = arith.constant 0 : index
    %12 = vector.load %arg5[%c0_8, %c0_9, %c0_10] : memref<1x8x64xf32, #tpu.memory_space<vmem>>, vector<1x8x64xf32>
    %13 = vector.shape_cast %12 : vector<1x8x64xf32> to vector<8x64xf32>
    %14 = vector.shape_cast %11 : vector<8x64xf32> to vector<1x8x64xf32>
    tpu.vector_store %arg5[%c0_8, %c0_9, %c0_10], %14 {strides = array<i32>} : memref<1x8x64xf32, #tpu.memory_space<vmem>>, vector<1x8x64xf32>,
    return
  }
  func.func @transform_0(%arg0: i32, %arg1: i32) -> (i32, i32, i32) {
    %c0_i32 = arith.constant 0 : i32
    %c0_i32_0 = arith.constant 0 : i32
    return %arg0, %arg1, %c0_i32 : i32, i32, i32
  }
  func.func @transform_1(%arg0: i32, %arg1: i32) -> (i32, i32, i32) {
    %c0_i32 = arith.constant 0 : i32
    %c0_i32_0 = arith.constant 0 : i32
    %c0_i32_1 = arith.constant 0 : i32
    return %c0_i32, %arg1, %c0_i32_0 : i32, i32, i32
  }
  func.func @transform_2(%arg0: i32, %arg1: i32) -> (i32, i32, i32) {
    %c0_i32 = arith.constant 0 : i32
    %c0_i32_0 = arith.constant 0 : i32
    %c0_i32_1 = arith.constant 0 : i32
    return %c0_i32, %arg1, %c0_i32_0 : i32, i32, i32
  }
  func.func @transform_3(%arg0: i32, %arg1: i32) -> (i32, i32, i32) {
    %c0_i32 = arith.constant 0 : i32
    %c0_i32_0 = arith.constant 0 : i32
    return %arg0, %arg1, %c0_i32 : i32, i32, i32
  }
}

</mosaic_0001>

<bundles_post_ra>
// kernel: conv_block_forward.3
= control target key start
LH: loop header
LB: loop body
LE: loop exit
PB: predicated region body
PF: predicated region fallthrough
CT: control target
= control target key end

     0   :  { %s436_s12 = smov 0   ;;  %s438_s13 = smov 0   ;;  %s472_s0 = inlined_call_operand.vmem [shape: f32[2,8,64], index: 0, kind: input, shape index: {}]   ;;  %s473_s1 = inlined_call_operand.vmem [shape: f32[1,8,1], index: 1, kind: input, shape index: {}]   ;;  %s474_s2 = inlined_call_operand.vmem [shape: f32[1,8,1], index: 2, kind: input, shape index: {}]   ;;  %s475_s3 = inlined_call_operand.vmem [shape: f32[2,8,64], index: 3, kind: output, shape index: {}]  }
   0x1   :  { %s440_s14 = smov 0  }
   0x2 LB: > { %s25_s15 = sadd.s32 1, %s409_s13  ;;  %p360_p0 = scmp.ge.s32.totalorder %s413_s14, 1  ;;  %s413_s14 = sphi %s440_s14, %s13_s14   ;;  %s409_s13 = sphi %s438_s13, %s477_s13   ;;  %s405_s12 = sphi %s436_s12, %s476_s12  }
   0x3   : > { %p27_p1 = scmp.ge.s32.totalorder %s25_s15, 2  ;;  %p173_p2 = scmp.lt.s32.totalorder %s413_s14, 3 }
   0x5   : > { %s479_s15 = smov (%p27_p1, %s25_s15), 0  ;;  %p174_p3 = pnand %p360_p0, %p173_p2 }
   0x6   : > { %v232_v0 = vld [vmem:[%s473_s1] sm:$0xff] (!%p174_p3)  ;;  %v415_v1 = vmov (!%p174_p3), 0   ;;  %p209_p4 = scmp.lt.s32.totalorder (!%p174_p3), %s405_s12, 1  ;;  %vm247_vm0 = vcmask (!%p174_p3), 523264  }
   0x7   : > { %177 = sbr.rel (%p174_p3) target bundleno = 145 (0x91), region = 32  ;;  %390 = vset.pattern.permute.xlu0 (!%p174_p3), %v415_v1  ;;  %v239_v2 = vld [vmem:[%s474_s2] sm:$0xff] (!%p174_p3) }
   0x8   : > { %235 = vperm.xlu0 (!%p174_p3), %390, %v232_v0  }
   0xc   : > { %242 = vperm.xlu0 (!%p174_p3), %390, %v239_v2  }
   0xe   : > { %s481_s12 = smov (!%p209_p4, %s405_s12), 1 }
   0xf   : > { %s361_s20 = sshll.u32 %s481_s12, 3 }
  0x10   : > { %s215_s23 = scalar_lea.vmem %s472_s0, %s361_s20  ;;  %s230_s26 = scalar_lea.vmem %s475_s3, %s361_s20 }
  0x11   : > { %v231_v4 = vld [vmem:[%s215_s23] sm:$0xff] }
  0x87   : > { %v236_v3 = vpop.permute.xlu0 %235 }
  0x88   : > { %v238_v5 = vmul.f32 %v236_v3, %v231_v4 }
  0x8b   : > { %v243_v6 = vpop.permute.xlu0 %242 }
  0x8c   : > { %v245_v7 = vadd.f32 %v243_v6, %v238_v5 }
  0x8e   : > { %v246_v8 = vmax.f32 %v245_v7, 0.0 }
  0x90   : > { %248 = vst.msk [vmem:[%s230_s26] sm:$0xff] %vm247_vm0, %v246_v8 }
  0x91 PF: > { %s13_s14 = sadd.s32 1, %s413_s14   ;;  %s476_s12 = smov %s409_s13 }
  0x92   : > { %p10_p5 = scmp.ge.s32.totalorder %s13_s14, 4   ;;  %s477_s13 = smov %s479_s15 }
  0x94   :  { %12 = sbr.rel (!%p10_p5) target bundleno = 2 (0x2), region = 68 }

// kernel: conv_block_forward.2
= control target key start
LH: loop header
LB: loop body
LE: loop exit
PB: predicated region body
PF: predicated region fallthrough
CT: control target
= control target key end

     0   :  { %s1285_s12 = smov 0   ;;  %s1287_s13 = smov 0   ;;  %s1387_s0 = inlined_call_operand.vmem [shape: f32[2,6,4,72], index: 0, kind: input, shape index: {}]   ;;  %s1388_s1 = inlined_call_operand.vmem [shape: f32[9,8,4], index: 1, kind: input, shape index: {}]   ;;  %s1389_s2 = inlined_call_operand.vmem [shape: f32[2,8,64], index: 2, kind: output, shape index: {0}]   ;;  %s1390_s3 = inlined_call_operand.vmem [shape: f32[2,8,2], index: 3, kind: output, shape index: {1}]  }
   0x1   :  { %s1289_s14 = smov 0  }
   0x2 LB: > { %s26_s15 = sadd.s32 1, %s1256_s13  ;;  %p1095_p0 = scmp.ge.s32.totalorder %s1260_s14, 1  ;;  %s1260_s14 = sphi %s1289_s14, %s14_s14   ;;  %s1256_s13 = sphi %s1287_s13, %s1392_s13   ;;  %s1252_s12 = sphi %s1285_s12, %s1391_s12  }
   0x3   : > { %p28_p1 = scmp.ge.s32.totalorder %s26_s15, 2  ;;  %p165_p2 = scmp.lt.s32.totalorder %s1260_s14, 3 }
   0x5   : > { %s1394_s15 = smov (%p28_p1, %s26_s15), 0  ;;  %p166_p3 = pnand %p1095_p0, %p165_p2 }
   0x6   : > { %p202_p4 = scmp.lt.s32.totalorder (!%p166_p3), %s1252_s12, 1  ;;  %v1262_v0 = vmov (!%p166_p3), 0.0   ;;  %vm1263_vm0 = vmmov (!%p166_p3), 0   ;;  %vm236_vm1 = vcmask (!%p166_p3), 1043456   ;;  %vm232_vm2 = vcmask (!%p166_p3), 31744   ;;  %v1112_v3 = vld [vmem:[%s1388_s1 + $0x10] sm:$0xff] (!%p166_p3) }
   0x7   : > { %169 = sbr.rel (%p166_p3) target bundleno = 524 (0x20c), region = 28  ;;  %1170 = vmatprep.subr.mxu0 (!%p166_p3), %v1262_v0  ;;  %1172 = vmatprep.mubr.msk.f32.mxu0 (!%p166_p3), %vm1263_vm0, %v1262_v0  ;;  %s1264_s22 = smov (!%p166_p3), 120   ;;  %v1099_v5 = vld [vmem:[%s1388_s1 + $0x30] sm:$0xff] (!%p166_p3)  ;;  %v1115_v7 = vld [vmem:[%s1388_s1 + $0x40] sm:$0xff] (!%p166_p3)  ;;  %v1119_v11 = vld [vmem:[%s1388_s1 + $0x18] sm:$0xff] (!%p166_p3)  ;;  %vm949_vm3 = vcmask (!%p166_p3), 523264  }
   0x8   : > { %1150 = vmatprep.subr.mxu1 (!%p166_p3), %v1262_v0  ;;  %1152 = vmatprep.mubr.msk.f32.mxu1 (!%p166_p3), %vm1263_vm0, %v1262_v0  ;;  %v226_v10 = vld [vmem:[%s1388_s1] sm:$0xff] (!%p166_p3)  ;;  %v1105_v13 = vld [vmem:[%s1388_s1 + $0x8] sm:$0xff] (!%p166_p3)  ;;  %v1108_v17 = vld [vmem:[%s1388_s1 + $0x38] sm:$0xff] (!%p166_p3)  ;;  %vm958_vm4 = vcmask (!%p166_p3), 7168   ;;  %vm960_vm5 = vcmask (!%p166_p3), 15360  }
   0x9   : > { %v1123_v15 = vld [vmem:[%s1388_s1 + $0x20] sm:$0xff] (!%p166_p3)  ;;  %v1127_v18 = vld [vmem:[%s1388_s1 + $0x28] sm:$0xff] (!%p166_p3) }
   0xe   : > { %s1396_s12 = smov (!%p202_p4, %s1252_s12), 1 }
   0xf   : > { %s1210_s16 = smul.u32 24, %s1396_s12 }
  0x11   : > { %s1311_s19 = scalar_lea.vmem %s1387_s0, %s1210_s16  ;;  %s1097_s16 = sshll.u32 %s1396_s12, 3 }
  0x12   : > { %v225_v1 = vld [vmem:[%s1311_s19] sm:$0xf]  ;;  %v1104_v2 = vld [vmem:[%s1311_s19 + $0x4] sm:$0xf]  ;;  %v1111_v4 = vld [vmem:[%s1311_s19 + $0x8] sm:$0xf] }
  0x13   : > { %230 = vrot.lane.b32.xlu0 %v225_v1, %s1264_s22  ;;  %467 = vrot.lane.b32.xlu1 %v1104_v2, %s1264_s22  ;;  %v1118_v9 = vld [vmem:[%s1311_s19 + $0xc] sm:$0xf]  ;;  %v1122_v12 = vld [vmem:[%s1311_s19 + $0x10] sm:$0xf] }
  0x14   : > { %1171 = vmatpush3.msk.msra.mxu0 %vm236_vm1, %v1111_v4  ;;  %v1126_v16 = vld [vmem:[%s1311_s19 + $0x14] sm:$0xf]  ;;  %s217_s19 = scalar_lea.vmem %s1389_s2, %s1097_s16 }
  0x15   : > { %1173 = vmatmul.mubr.msk.f32.vlgmr.msra.gmra.mrb[0].mxu0 %vm232_vm2, %v1112_v3  ;;  %1175 = vmatprep.subr.mxu0 %v1262_v0 }
  0x16   : > { %1177 = vmatprep.mubr.msk.f32.mxu0 %vm1263_vm0, %v1262_v0 }
  0x17   : > { %628 = vrot.lane.b32.xlu0 %v1111_v4, %s1264_s22  ;;  %s224_s22 = scalar_lea.vmem %s1390_s3, %s1097_s16 }
  0x85   : > { %v231_v6 = vpop.permute.xlu0 %230  ;;  %v468_v14 = vpop.permute.xlu1 %467 }
  0x86   : > { %1151 = vmatpush3.msk.msra.mxu1 %vm236_vm1, %v231_v6 }
  0x87   : > { %1153 = vmatmul.mubr.msk.f32.vlgmr.msra.gmra.mrb[0].mxu1 %vm232_vm2, %v1099_v5  ;;  %1155 = vmatprep.subr.mxu1 %v1262_v0 }
  0x88   : > { %1156 = vmatpush3.msk.msra.mxu1 %vm236_vm1, %v225_v1  ;;  %1157 = vmatprep.mubr.msk.f32.mxu1 %vm1263_vm0, %v1262_v0 }
  0x89   : > { %v629_v8 = vpop.permute.xlu0 %628  ;;  %1160 = vmatprep.subr.mxu1 %v1262_v0 }
  0x8a   : > { %1176 = vmatpush3.msk.msra.mxu0 %vm236_vm1, %v629_v8 }
  0x8b   : > { %1178 = vmatmul.mubr.msk.f32.vlgmr.msra.gmra.mrb[0].mxu0 %vm232_vm2, %v1115_v7  ;;  %1180 = vmatprep.subr.mxu0 %v1262_v0 }
  0x8c   : > { %1181 = vmatpush3.msk.msra.mxu0 %vm236_vm1, %v1118_v9  ;;  %1182 = vmatprep.mubr.msk.f32.mxu0 %vm1263_vm0, %v1262_v0 }
  0x8d   : > { %1185 = vmatprep.subr.mxu0 %v1262_v0 }
  0x8f   : > { %1158 = vmatmul.mubr.msk.f32.vlgmr.msra.gmra.mrb[0].mxu1 %vm232_vm2, %v226_v10 }
  0x90   : > { %1161 = vmatpush3.msk.msra.mxu1 %vm236_vm1, %v1104_v2  ;;  %1162 = vmatprep.mubr.msk.f32.mxu1 %vm1263_vm0, %v1262_v0 }
  0x91   : > { %1165 = vmatprep.subr.mxu1 %v1262_v0 }
  0x93   : > { %1183 = vmatmul.mubr.msk.f32.vlgmr.msra.gmra.mrb[0].mxu0 %vm232_vm2, %v1119_v11 }
  0x94   : > { %1186 = vmatpush3.msk.msra.mxu0 %vm236_vm1, %v1122_v12  ;;  %1187 = vmatprep.mubr.msk.f32.mxu0 %vm1263_vm0, %v1262_v0 }
  0x95   : > { %1190 = vmatprep.subr.mxu0 %v1262_v0 }
  0x97   : > { %1163 = vmatmul.mubr.msk.f32.vlgmr.msra.gmra.mrb[0].mxu1 %vm232_vm2, %v1105_v13 }
  0x98   : > { %1166 = vmatpush3.msk.msra.mxu1 %vm236_vm1, %v468_v14  ;;  %1167 = vmatprep.mubr.msk.f32.mxu1 %vm1263_vm0, %v1262_v0 }
  0x9b   : > { %1188 = vmatmul.mubr.msk.f32.vlgmr.msra.gmra.mrb[0].mxu0 %vm232_vm2, %v1123_v15 }
  0x9c   : > { %1191 = vmatpush3.msk.msra.mxu0 %vm236_vm1, %v1126_v16  ;;  %1192 = vmatprep.mubr.msk.f32.mxu0 %vm1263_vm0, %v1262_v0 }
  0x9f   : > { %1168 = vmatmul.mubr.msk.f32.vlgmr.msra.gmra.mrb[0].mxu1 %vm232_vm2, %v1108_v17 }
  0xa3   : > { %1193 = vmatmul.mubr.msk.f32.vlgmr.msra.gmra.mrb[0].mxu0 %vm232_vm2, %v1127_v18 }
 0x172   : > { %v540_v19 = vpop.f32.mrb[0].mxu1 }
 0x173   : > { %v1169_v20 = vpop.f32.mrb[1].mxu1 }
 0x176   : > { %v944_v21 = vpop.f32.mrb[0].mxu0 }
 0x177   : > { %v1195_v22 = vadd.f32 %v944_v21, %v540_v19  ;;  %v1194_v23 = vpop.f32.mrb[1].mxu0 }
 0x179   : > { %v951_v24 = vsel %vm949_vm3, %v1195_v22, 0.0  ;;  %950 = vst.msk [vmem:[%s217_s19] sm:$0xff] %vm949_vm3, %v1195_v22  ;;  %v954_v25 = vmul.f32 %v1195_v22, %v1195_v22 }
 0x17a   : > { %952 = vadd.xlane.f32.xlu1 %v951_v24 }
 0x17b   : > { %v955_v26 = vsel %vm949_vm3, %v954_v25, 0.0 }
 0x17c   : > { %956 = vadd.xlane.f32.xlu0 %v955_v26 }
 0x207   : > { %v953_v27 = vpop.xlane.xlu1 %952 }
 0x209   : > { %v957_v28 = vpop.xlane.xlu0 %956 }
 0x20a   : > { %v959_v29 = vsel %vm958_vm4, %v953_v27, %v957_v28 }
 0x20b   : > { %961 = vst.msk [vmem:[%s224_s22] sm:$0xff] %vm960_vm5, %v959_v29 }
 0x20c PF: > { %s14_s14 = sadd.s32 1, %s1260_s14   ;;  %s1391_s12 = smov %s1256_s13 }
 0x20d   : > { %p11_p5 = scmp.ge.s32.totalorder %s14_s14, 4   ;;  %s1392_s13 = smov %s1394_s15 }
 0x20f   :  { %13 = sbr.rel (!%p11_p5) target bundleno = 2 (0x2), region = 86 }

</bundles_post_ra>
